<compile_context>
chip_gen: v5e
topology: v5e:2x2
jax: 0.10.0
libtpu: 0.0.40
codegen_flags: <defaults>
</compile_context>

<pallas_src>
import functools

import jax
import jax.numpy as jnp
from jax.experimental import pallas as pl
from jax.experimental.pallas import tpu as pltpu


def _round_up(n, m):
    return ((n + m - 1) // m) * m


def spatial_purity_kernel(body_ref, top_ref, bot_ref, o_ref, strip_ref, *,
                          width, size, rows):
    """One (batch, row-strip) grid step.

    body_ref : (1, C, R*W)     strip body rows [r*R, r*R + R), spatially flattened
    top_ref  : (1, 1, C, p*W)  p halo rows above the strip (zeros at the image top)
    bot_ref  : (1, 1, C, p*W)  p halo rows below the strip (zeros at the image bottom)
    o_ref    : (1, 1, R*W)     purity for the strip rows
    strip_ref: (C, PADDED)     VMEM scratch holding [top | body | bot | lane pad]
    """
    C = body_ref.shape[1]
    W = width
    p = size // 2
    R = rows
    halo = p * W
    inner = R * W
    total = (R + 2 * p) * W
    padded = strip_ref.shape[1]

    # --- Assemble the strip. The halo rows carry the conv's 'zeros' padding as real
    # --- data, so the vertical pass below needs no boundary masks.
    strip_ref[:, 0:halo] = top_ref[0, 0]
    strip_ref[:, halo:halo + inner] = body_ref[0]
    strip_ref[:, halo + inner:total] = bot_ref[0, 0]
    if padded > total:  # static: zero the lane-alignment tail (never read meaningfully)
        strip_ref[:, total:padded] = jnp.zeros((C, padded - total), strip_ref.dtype)

    xs = strip_ref[...].astype(jnp.float32)  # (C, padded)

    # Column coordinate per lane (hoisted, computed once).
    col = jax.lax.broadcasted_iota(jnp.int32, (1, padded), 1) % W

    # --- Horizontal box filter ('zeros' padding): lane rolls (XLU) + column masks.
    row_sum = xs
    for d in range(1, p + 1):
        plus_d = pltpu.roll(xs, padded - d, axis=1)   # value at lane i + d
        minus_d = pltpu.roll(xs, d, axis=1)           # value at lane i - d
        row_sum = row_sum + jnp.where(col < W - d, plus_d, 0.0)
        row_sum = row_sum + jnp.where(col >= d, minus_d, 0.0)

    # --- Vertical box filter: halo rows already hold zeros, so plain roll + add.
    summary = row_sum
    for d in range(1, p + 1):
        summary = summary + pltpu.roll(row_sum, padded - d * W, axis=1)  # row below
        summary = summary + pltpu.roll(row_sum, d * W, axis=1)           # row above

    summary = summary[:, halo:halo + inner]  # keep only the body rows -> (C, R*W)

    # --- Channel-normalized entropy (purity).
    count = jnp.sum(summary, axis=0, keepdims=True)       # (1, R*W)
    inv = pl.reciprocal(count, approx=False)              # one exact reciprocal / pixel
    dist = summary * inv                                   # (C, R*W)
    plogp = jnp.sum(dist * jnp.log(dist + 1e-6), axis=0, keepdims=True)
    o_ref[0] = -plogp                                      # negation hoisted to (1, R*W)


def _choose_strip_rows(H, W, C, p, itemsize, max_rows=None, budget_bytes=8 << 20):
    """Largest R dividing H with a lane-legal block ((R*W) % 128 == 0 or R == H),
    R >= p (halo fits in one neighboring strip), and body block within the byte budget."""
    legal = [R for R in range(1, H + 1)
             if H % R == 0 and (R == H or ((R * W) % 128 == 0 and R >= p))]
    if max_rows is not None:
        capped = [R for R in legal if R <= max_rows]
        legal = capped or legal
    fitting = [R for R in legal if C * R * W * itemsize <= budget_bytes]
    return max(fitting) if fitting else min(legal)


def spatial_purity(x, *, size=3, max_rows_per_strip=None, strip_budget_bytes=8 << 20):
    """x: (B, C, H, W) float -> (B, 1, H, W) f32.  Matches SpatialPurity.forward."""
    assert size % 2 == 1, "error size"
    B, C, H, W = x.shape
    p = size // 2
    itemsize = jnp.dtype(x.dtype).itemsize

    R = _choose_strip_rows(H, W, C, p, itemsize, max_rows_per_strip, strip_budget_bytes)
    S = H // R
    inner = R * W
    halo = p * W
    padded = _round_up((R + 2 * p) * W, 128)

    # Lane-flattened body view plus per-strip halo rows (zeros beyond the image,
    # matching 'zeros' conv padding).  Halo arrays are only ~2p/R of x in size.
    x_flat = x.reshape(B, C, H * W)
    xr = x.reshape(B, C, S, R, W)
    zrow = jnp.zeros((B, C, 1, p, W), x.dtype)
    top = jnp.concatenate([zrow, xr[:, :, :S - 1, R - p:, :]], axis=2)  # rows r*R-p .. r*R
    bot = jnp.concatenate([xr[:, :, 1:, :p, :], zrow], axis=2)          # rows (r+1)*R .. +p
    top = top.transpose(0, 2, 1, 3, 4).reshape(B, S, C, halo)
    bot = bot.transpose(0, 2, 1, 3, 4).reshape(B, S, C, halo)

    kernel = functools.partial(spatial_purity_kernel, width=W, size=size, rows=R)

    cost = pl.CostEstimate(
        flops=B * C * H * W * (6 * p + 5),          # filter adds/selects + entropy muls
        transcendentals=B * H * W * (C + 1),        # C logs + 1 reciprocal per pixel
        bytes_accessed=itemsize * B * C * H * W + 4 * B * H * W,
    )

    body_bytes = C * inner * itemsize
    halo_bytes = C * halo * itemsize
    out_bytes = inner * 4
    scratch_bytes = C * padded * itemsize
    need = 2 * (body_bytes + 2 * halo_bytes + out_bytes) + scratch_bytes
    vmem_limit = int(min(64 << 20, max(2 * need + (4 << 20), 16 << 20)))

    out_flat = pl.pallas_call(
        kernel,
        out_shape=jax.ShapeDtypeStruct((B, 1, H * W), jnp.float32),
        grid=(B, S),
        in_specs=[
            pl.BlockSpec((1, C, inner), lambda b, r: (b, 0, r)),
            pl.BlockSpec((1, 1, C, halo), lambda b, r: (b, r, 0, 0)),
            pl.BlockSpec((1, 1, C, halo), lambda b, r: (b, r, 0, 0)),
        ],
        out_specs=pl.BlockSpec((1, 1, inner), lambda b, r: (b, 0, r)),
        scratch_shapes=[pltpu.VMEM((C, padded), x.dtype)],
        compiler_params=pltpu.CompilerParams(
            dimension_semantics=("parallel", "parallel"),
            vmem_limit_bytes=vmem_limit,
        ),
        cost_estimate=cost,
    )(x_flat, top, bot)
    return out_flat.reshape(B, 1, H, W)


def ref_spatial_purity(x, *, size=3):
    """Plain-JAX reference mirroring the PyTorch forward (all-ones depthwise conv)."""
    B, C, H, W = x.shape
    rhs = jnp.ones((C, 1, size, size), dtype=x.dtype)  # OIHW, depthwise (O=C, I=1)
    summary = jax.lax.conv_general_dilated(
        x, rhs, window_strides=(1, 1), padding="SAME", feature_group_count=C)
    count = jnp.sum(summary, axis=1, keepdims=True)
    dist = summary / count
    return jnp.sum(-dist * jnp.log(dist + 1e-6), axis=1, keepdims=True)


if __name__ == "__main__":
    k1, k2 = jax.random.split(jax.random.PRNGKey(0))

    # Main check: B=2, C=4, 16x16, size=3, forced into 2 row-strips per image so the
    # halo / strip-tiling path is exercised.
    B, C, H, W, SIZE = 2, 4, 16, 16, 3
    x = jax.nn.softmax(jax.random.normal(k1, (B, C, H, W), dtype=jnp.float32), axis=1)
    ref = jax.block_until_ready(ref_spatial_purity(x, size=SIZE))

    out = jax.block_until_ready(spatial_purity(x, size=SIZE, max_rows_per_strip=8))
    assert out.shape == (B, 1, H, W)
    assert jnp.allclose(out, ref, atol=1e-4, rtol=1e-4), (
        f"strip path max abs err {jnp.max(jnp.abs(out - ref))}")

    # Whole-image (single-strip) path.
    out1 = jax.block_until_ready(spatial_purity(x, size=SIZE))
    assert jnp.allclose(out1, ref, atol=1e-4, rtol=1e-4), (
        f"single-strip path max abs err {jnp.max(jnp.abs(out1 - ref))}")

    # Larger window (size=5 -> p=2), more strips, odd channel count.
    B2, C2, H2, W2, SIZE2 = 1, 3, 32, 16, 5
    x2 = jax.nn.softmax(jax.random.normal(k2, (B2, C2, H2, W2), dtype=jnp.float32), axis=1)
    out2 = jax.block_until_ready(spatial_purity(x2, size=SIZE2, max_rows_per_strip=8))
    ref2 = jax.block_until_ready(ref_spatial_purity(x2, size=SIZE2))
    assert jnp.allclose(out2, ref2, atol=1e-4, rtol=1e-4), (
        f"size-5 path max abs err {jnp.max(jnp.abs(out2 - ref2))}")

    print("KERNEL_OK")
</pallas_src>

<mosaic_0001>
module attributes {stable_mosaic.version = 11 : i64} {
  func.func @spatial_purity_kernel(%arg0: i32, %arg1: i32, %arg2: memref<1x4x128xf32, #tpu.memory_space<vmem>>, %arg3: memref<1x1x4x16xf32, #tpu.memory_space<vmem>>, %arg4: memref<1x1x4x16xf32, #tpu.memory_space<vmem>>, %arg5: memref<1x1x128xf32, #tpu.memory_space<vmem>>, %arg6: memref<4x256xf32, #tpu.memory_space<vmem>>) attributes {dimension_semantics = [#tpu.dimension_semantics<parallel>, #tpu.dimension_semantics<parallel>], iteration_bounds = array<i64: 2, 2>, scalar_prefetch = 0 : i64, scratch_operands = 1 : i64, tpu.core_type = #tpu.core_type<tc>, window_params = [{transform_indices = @transform_0, window_bounds = array<i64: 1, 4, 128>}, {transform_indices = @transform_1, window_bounds = array<i64: 1, 1, 4, 16>}, {transform_indices = @transform_2, window_bounds = array<i64: 1, 1, 4, 16>}, {transform_indices = @transform_3, window_bounds = array<i64: 1, 1, 128>}]} {
    %c0 = arith.constant 0 : index
    %c0_0 = arith.constant 0 : index
    %c0_1 = arith.constant 0 : index
    %c0_2 = arith.constant 0 : index
    %0 = vector.load %arg3[%c0, %c0_0, %c0_1, %c0_2] : memref<1x1x4x16xf32, #tpu.memory_space<vmem>>, vector<1x1x4x16xf32>
    %1 = vector.shape_cast %0 : vector<1x1x4x16xf32> to vector<4x16xf32>
    %c0_3 = arith.constant 0 : index
    %c0_4 = arith.constant 0 : index
    %2 = vector.load %arg6[%c0_3, %c0_4] : memref<4x256xf32, #tpu.memory_space<vmem>>, vector<4x16xf32>
    tpu.vector_store %arg6[%c0_3, %c0_4], %1 {strides = array<i32>} : memref<4x256xf32, #tpu.memory_space<vmem>>, vector<4x16xf32>,
    %c0_5 = arith.constant 0 : index
    %c0_6 = arith.constant 0 : index
    %c0_7 = arith.constant 0 : index
    %3 = vector.load %arg2[%c0_5, %c0_6, %c0_7] : memref<1x4x128xf32, #tpu.memory_space<vmem>>, vector<1x4x128xf32>
    %4 = vector.shape_cast %3 : vector<1x4x128xf32> to vector<4x128xf32>
    %c0_8 = arith.constant 0 : index
    %c16 = arith.constant 16 : index
    %5 = vector.load %arg6[%c0_8, %c16] : memref<4x256xf32, #tpu.memory_space<vmem>>, vector<4x128xf32>
    tpu.vector_store %arg6[%c0_8, %c16], %4 {strides = array<i32>} : memref<4x256xf32, #tpu.memory_space<vmem>>, vector<4x128xf32>,
    %c0_9 = arith.constant 0 : index
    %c0_10 = arith.constant 0 : index
    %c0_11 = arith.constant 0 : index
    %c0_12 = arith.constant 0 : index
    %6 = vector.load %arg4[%c0_9, %c0_10, %c0_11, %c0_12] : memref<1x1x4x16xf32, #tpu.memory_space<vmem>>, vector<1x1x4x16xf32>
    %7 = vector.shape_cast %6 : vector<1x1x4x16xf32> to vector<4x16xf32>
    %c0_13 = arith.constant 0 : index
    %c144 = arith.constant 144 : index
    %8 = vector.load %arg6[%c0_13, %c144] : memref<4x256xf32, #tpu.memory_space<vmem>>, vector<4x16xf32>
    tpu.vector_store %arg6[%c0_13, %c144], %7 {strides = array<i32>} : memref<4x256xf32, #tpu.memory_space<vmem>>, vector<4x16xf32>,
    %cst = arith.constant 0.000000e+00 : f32
    %9 = vector.broadcast %cst : f32 to vector<4x96xf32>
    %c0_14 = arith.constant 0 : index
    %c160 = arith.constant 160 : index
    %10 = vector.load %arg6[%c0_14, %c160] : memref<4x256xf32, #tpu.memory_space<vmem>>, vector<4x96xf32>
    tpu.vector_store %arg6[%c0_14, %c160], %9 {strides = array<i32>} : memref<4x256xf32, #tpu.memory_space<vmem>>, vector<4x96xf32>,
    %c0_15 = arith.constant 0 : index
    %c0_16 = arith.constant 0 : index
    %11 = vector.load %arg6[%c0_15, %c0_16] : memref<4x256xf32, #tpu.memory_space<vmem>>, vector<4x256xf32>
    %12 = tpu.iota {dimensions = array<i32: 1>} : vector<1x256xi32>
    %c16_i32 = arith.constant 16 : i32
    %c0_i32 = arith.constant 0 : i32
    %13 = arith.cmpi eq, %c16_i32, %c0_i32 : i32
    %c1_i32 = arith.constant 1 : i32
    %14 = arith.select %13, %c1_i32, %c16_i32 : i32
    %15 = vector.broadcast %14 : i32 to vector<1x256xi32>
    %16 = arith.remsi %12, %15 : vector<1x256xi32>
    %c0_i32_17 = arith.constant 0 : i32
    %17 = vector.broadcast %c0_i32_17 : i32 to vector<1x256xi32>
    %18 = arith.cmpi ne, %16, %17 : vector<1x256xi32>
    %c0_i32_18 = arith.constant 0 : i32
    %19 = vector.broadcast %c0_i32_18 : i32 to vector<1x256xi32>
    %20 = arith.cmpi slt, %16, %19 : vector<1x256xi32>
    %c0_i32_19 = arith.constant 0 : i32
    %21 = arith.cmpi slt, %14, %c0_i32_19 : i32
    %22 = vector.broadcast %21 : i1 to vector<1x256xi1>
    %23 = vector.broadcast %22 : vector<1x256xi1> to vector<1x256xi1>
    %24 = arith.xori %20, %23 : vector<1x256xi1>
    %25 = arith.andi %24, %18 : vector<1x256xi1>
    %26 = vector.broadcast %14 : i32 to vector<1x256xi32>
    %27 = arith.addi %16, %26 : vector<1x256xi32>
    %28 = arith.select %25, %27, %16 : vector<1x256xi1>, vector<1x256xi32>
    %c255_i32 = arith.constant 255 : i32
    %29 = tpu.dynamic_rotate %11 by %c255_i32 dim 1 : vector<4x256xf32>, i32 -> vector<4x256xf32>
    %c1_i32_20 = arith.constant 1 : i32
    %30 = tpu.dynamic_rotate %11 by %c1_i32_20 dim 1 : vector<4x256xf32>, i32 -> vector<4x256xf32>
    %c15_i32 = arith.constant 15 : i32
    %31 = vector.broadcast %c15_i32 : i32 to vector<1x256xi32>
    %32 = arith.cmpi slt, %28, %31 : vector<1x256xi32>
    %cst_21 = arith.constant 0.000000e+00 : f32
    %33 = vector.shape_cast %32 : vector<1x256xi1> to vector<1x256xi1>
    %34 = vector.broadcast %33 : vector<1x256xi1> to vector<4x256xi1>
    %35 = vector.broadcast %cst_21 : f32 to vector<4x256xf32>
    %36 = arith.select %34, %29, %35 : vector<4x256xi1>, vector<4x256xf32>
    %37 = arith.addf %11, %36 : vector<4x256xf32>
    %c1_i32_22 = arith.constant 1 : i32
    %38 = vector.broadcast %c1_i32_22 : i32 to vector<1x256xi32>
    %39 = arith.cmpi sge, %28, %38 : vector<1x256xi32>
    %cst_23 = arith.constant 0.000000e+00 : f32
    %40 = vector.shape_cast %39 : vector<1x256xi1> to vector<1x256xi1>
    %41 = vector.broadcast %40 : vector<1x256xi1> to vector<4x256xi1>
    %42 = vector.broadcast %cst_23 : f32 to vector<4x256xf32>
    %43 = arith.select %41, %30, %42 : vector<4x256xi1>, vector<4x256xf32>
    %44 = arith.addf %37, %43 : vector<4x256xf32>
    %c240_i32 = arith.constant 240 : i32
    %45 = tpu.dynamic_rotate %44 by %c240_i32 dim 1 : vector<4x256xf32>, i32 -> vector<4x256xf32>
    %46 = arith.addf %44, %45 : vector<4x256xf32>
    %c16_i32_24 = arith.constant 16 : i32
    %47 = tpu.dynamic_rotate %44 by %c16_i32_24 dim 1 : vector<4x256xf32>, i32 -> vector<4x256xf32>
    %48 = arith.addf %46, %47 : vector<4x256xf32>
    %49 = vector.extract_strided_slice %48 {offsets = [0, 16], sizes = [4, 128], strides = [1, 1]} : vector<4x256xf32> to vector<4x128xf32>
    %cst_25 = arith.constant dense<0.000000e+00> : vector<128xf32>
    %50 = vector.multi_reduction <add>, %49, %cst_25 [0] : vector<4x128xf32> to vector<128xf32>
    %51 = vector.shape_cast %50 : vector<128xf32> to vector<1x128xf32>
    %52 = tpu.reciprocal %51 : vector<1x128xf32> -> vector<1x128xf32>
    %53 = vector.broadcast %52 : vector<1x128xf32> to vector<4x128xf32>
    %54 = arith.mulf %49, %53 : vector<4x128xf32>
    %cst_26 = arith.constant 9.99999997E-7 : f32
    %55 = vector.broadcast %cst_26 : f32 to vector<4x128xf32>
    %56 = arith.addf %54, %55 : vector<4x128xf32>
    %57 = math.log %56 : vector<4x128xf32>
    %58 = arith.mulf %54, %57 : vector<4x128xf32>
    %cst_27 = arith.constant dense<0.000000e+00> : vector<128xf32>
    %59 = vector.multi_reduction <add>, %58, %cst_27 [0] : vector<4x128xf32> to vector<128xf32>
    %60 = vector.shape_cast %59 : vector<128xf32> to vector<1x128xf32>
    %cst_28 = arith.constant 0.000000e+00 : f32
    %61 = vector.broadcast %cst_28 : f32 to vector<1x128xf32>
    %62 = arith.subf %61, %60 : vector<1x128xf32>
    %c0_29 = arith.constant 0 : index
    %c0_30 = arith.constant 0 : index
    %c0_31 = arith.constant 0 : index
    %63 = vector.load %arg5[%c0_29, %c0_30, %c0_31] : memref<1x1x128xf32, #tpu.memory_space<vmem>>, vector<1x1x128xf32>
    %64 = vector.shape_cast %63 : vector<1x1x128xf32> to vector<1x128xf32>
    %65 = vector.shape_cast %62 : vector<1x128xf32> to vector<1x1x128xf32>
    tpu.vector_store %arg5[%c0_29, %c0_30, %c0_31], %65 {strides = array<i32>} : memref<1x1x128xf32, #tpu.memory_space<vmem>>, vector<1x1x128xf32>,
    return
  }
  func.func @transform_0(%arg0: i32, %arg1: i32) -> (i32, i32, i32) {
    %c0_i32 = arith.constant 0 : i32
    %c0_i32_0 = arith.constant 0 : i32
    return %arg0, %c0_i32, %arg1 : i32, i32, i32
  }
  func.func @transform_1(%arg0: i32, %arg1: i32) -> (i32, i32, i32, i32) {
    %c0_i32 = arith.constant 0 : i32
    %c0_i32_0 = arith.constant 0 : i32
    %c0_i32_1 = arith.constant 0 : i32
    return %arg0, %arg1, %c0_i32, %c0_i32_0 : i32, i32, i32, i32
  }
  func.func @transform_2(%arg0: i32, %arg1: i32) -> (i32, i32, i32, i32) {
    %c0_i32 = arith.constant 0 : i32
    %c0_i32_0 = arith.constant 0 : i32
    %c0_i32_1 = arith.constant 0 : i32
    return %arg0, %arg1, %c0_i32, %c0_i32_0 : i32, i32, i32, i32
  }
  func.func @transform_3(%arg0: i32, %arg1: i32) -> (i32, i32, i32) {
    %c0_i32 = arith.constant 0 : i32
    %c0_i32_0 = arith.constant 0 : i32
    return %arg0, %c0_i32, %arg1 : i32, i32, i32
  }
}

</mosaic_0001>

<bundles_post_ra>
// kernel: tpu_custom_call.1
= control target key start
LH: loop header
LB: loop body
LE: loop exit
PB: predicated region body
PF: predicated region fallthrough
CT: control target
= control target key end

     0   :  { %s1196_s0 = inlined_call_operand.hbm [shape: f32[2,4,256], index: 0, kind: input, shape index: {}]   ;;  %s1197_s1 = inlined_call_operand.hbm [shape: f32[2,2,4,16], index: 1, kind: input, shape index: {}]   ;;  %s1198_s2 = inlined_call_operand.hbm [shape: f32[2,2,4,16], index: 2, kind: input, shape index: {}]   ;;  %s1199_s3 = inlined_call_operand.hbm [shape: f32[2,1,256], index: 3, kind: output, shape index: {}]  }
   0x1   :  { %1205 = sst [smem:[#allocation19_spill]] %s1197_s1 }
   0x2   :  { %8 = vsyncpa [#allocation4], 0 }
   0x3   :  { %10 = vsyncpa [#allocation4 + $0x1], 0 }
   0x4   :  { %11 = vsyncpa [#allocation7], 0 }
   0x5   :  { %13 = vsyncpa [#allocation7 + $0x1], 0 }
   0x6   :  { %14 = vsyncpa [#allocation5], 0 }
   0x7   :  { %16 = vsyncpa [#allocation5 + $0x1], 0  ;;  %s1002_s12 = smov 0   ;;  %s1004_s13 = smov 0  }
   0x8   :  { %s1006_s14 = smov 0   ;;  %s1008_s15 = smov 0  }
   0x9   :  { %s1010_s16 = smov 0   ;;  %s1012_s17 = smov 0  }
   0xa   :  { %s1014_s18 = smov 0   ;;  %s1016_s19 = smov 0  }
   0xb LB: > { %1206 = sst [smem:[#allocation13_spill]] %s955_s14  ;;  %s1043_s20 = sadd.s32 4294967295, %s975_s19   ;;  %s975_s19 = sphi %s1016_s19, %s22_s19   ;;  %s971_s18 = sphi %s1014_s18, %s1224_s18   ;;  %s967_s17 = sphi %s1012_s17, %s1223_s17   ;;  %s963_s16 = sphi %s1010_s16, %s1222_s16   ;;  %s959_s15 = sphi %s1008_s15, %s1221_s15   ;;  %s955_s14 = sphi %s1006_s14, %s1220_s14   ;;  %s951_s13 = sphi %s1004_s13, %s1226_s13   ;;  %s947_s12 = sphi %s1002_s12, %s1225_s12  }
   0xc   : > { %1207 = sst [smem:[#allocation14_spill]] %s967_s17  ;;  %s665_s21 = sadd.s32 4294967294, %s975_s19  }
   0xd   : > { %1208 = sst [smem:[#allocation15_spill]] %s971_s18  ;;  %s31_s22 = sadd.s32 1, %s967_s17 }
   0xe   : > { %s34_s23 = sadd.s32 1, %s971_s18  ;;  %p32_p0 = scmp.ge.s32.totalorder %s31_s22, 2 }
   0xf   : > { %s43_s24 = sadd.s32 1, %s955_s14  ;;  %p50_p1 = scmp.ne.s32.totalorder %s955_s14, %s951_s13 }
  0x10   : > { %p51_p2 = scmp.eq.s32.totalorder %s975_s19, 0  ;;  %s1228_s22 = smov (%p32_p0, %s31_s22), 0 }
  0x11   : > { %1209 = sst [smem:[#allocation16_spill]] %s1228_s22  ;;  %s1230_s23 = smov (!%p32_p0, %s34_s23), %s971_s18 }
  0x12   : > { %s39_s25 = ssub.s32 %s967_s17, %s1228_s22  ;;  %p1057_p3 = por %p51_p2, %p50_p1 }
  0x13   : > { %p36_p4 = scmp.ge.s32.totalorder %s1230_s23, 2  ;;  %p56_p5 = scmp.ne.s32.totalorder %s951_s13, %s947_s12 }
  0x14   : > { %p57_p6 = scmp.eq.s32.totalorder %s1043_s20, 0  ;;  %p138_p7 = scmp.eq.s32.totalorder %s1043_s20, 3 }
  0x15   : > { %s1232_s23 = smov (%p36_p4, %s1230_s23), 0  ;;  %p144_p10 = scmp.eq.s32.totalorder %s665_s21, 3 }
  0x16   : > { %1211 = sst [smem:[#allocation17_spill]] %s1232_s23  ;;  %p1067_p8 = por %p57_p6, %p56_p5 }
  0x17   : > { %p1071_p9 = por %p138_p7, %p50_p1  ;;  %s38_s29 = ssub.s32 %s971_s18, %s1232_s23 }
  0x18   : > { %s40_s30 = sor.u32 %s39_s25, %s38_s29  ;;  %p1077_p12 = por %p144_p10, %p56_p5 }
  0x19   : > { %p41_p11 = scmp.eq.s32.totalorder %s40_s30, 0  ;;  %p706_p13 = scmp.lt.s32.totalorder %s975_s19, 4 }
  0x1a   : > { %s164_s5 = sand.u32 1, %s955_s14   ;;  %s669_s8 = sshll.u32 %s971_s18, 1 }
  0x1b   : > { %s1084_s6 = scalar_select %p41_p11, %s955_s14, %s43_s24  }
  0x1c   : > { %s668_s7 = sshll.u32 %s164_s5, 2  ;;  %s172_s9 = sadd.s32 %s967_s17, %s669_s8 }
  0x1d   : > { %1215 = sst [smem:[#allocation18_spill]] %s1084_s6  ;;  %p1090_p0 = pnand %p706_p13, %p1057_p3 }
  0x1e   : > { %s670_s11 = sshll.u32 %s172_s9, 2  ;;  %s185_s21 = sand.u32 1, %s975_s19  }
  0x1f   : > { %s1217_s1 = sld [smem:[#allocation19_spill]]  ;;  %s189_s22 = scalar_lea.vmem [#allocation6], %s668_s7 }
  0x20   : > { %s199_s24 = sshll.u32 %s189_s22, 4  ;;  %s186_s18 = scalar_lea.sflag [#allocation7], %s185_s21  ;;  %s200_s24 = int_to_ptr.vmem [resolvable:$true] %s199_s24 }
  0x21   : > { %p677_p1 = scmp.ge.s32.totalorder %s975_s19, 1  ;;  %p225_p2 = scmp.lt.s32.totalorder %s975_s19, 5 }
  0x22   : > { %s174_s25 = scalar_lea.hbm %s1196_s0, %s670_s11  ;;  %s165_s22 = scalar_lea.sflag [#allocation4], %s164_s5 }
  0x23   : > { %p1102_p3 = pnand %p677_p1, %p225_p2  ;;  %s176_s29 = sshll.u32 %s174_s25, 4  ;;  %s177_s29 = int_to_ptr.hbm [resolvable:$true] %s176_s29 }
  0x24   : > { %s210_s6 = scalar_lea.vmem [#allocation8], %s668_s7  ;;  %s1119_s8 = sand.u32 (!%p1102_p3), 1, %s951_s13  }
  0x25   : > { %s195_s30 = scalar_lea.hbm %s1217_s1, %s670_s11  ;;  %s220_s14 = sshll.u32 %s210_s6, 4  ;;  %s221_s14 = int_to_ptr.vmem [resolvable:$true] %s220_s14 }
  0x26   : > { %s197_s23 = sshll.u32 %s195_s30, 4  ;;  %s168_s30 = scalar_lea.vmem [#allocation3], %s668_s7  ;;  %s198_s23 = int_to_ptr.hbm [resolvable:$true] %s197_s23 }
  0x27   : > { %698 = dma.hbm_to_vmem [thread:$0]  (!%p1090_p0), %s198_s23, 64, %s200_s24, %s186_s18  }
  0x28   : > { %s178_s1 = sshll.u32 %s168_s30, 4  ;;  %s216_s24 = scalar_lea.hbm %s1198_s2, %s670_s11  ;;  %s179_s1 = int_to_ptr.vmem [resolvable:$true] %s178_s1 }
  0x29   : > { %695 = dma.hbm_to_vmem [thread:$0]  (!%p1090_p0), %s177_s29, 64, %s179_s1, %s165_s22  }
  0x2a   : > { %s218_s17 = sshll.u32 %s216_s24, 4  ;;  %229 = sbr.rel (%p1102_p3) target bundleno = 660 (0x294), region = 32  ;;  %s219_s17 = int_to_ptr.hbm [resolvable:$true] %s218_s17 }
  0x2b   : > { %701 = dma.hbm_to_vmem [thread:$0]  (!%p1090_p0), %s219_s17, 64, %s221_s14, %s186_s18  }
  0x2c   : > { %s678_s1 = sshll.u32 (!%p1102_p3), %s1119_s8, 2  ;;  %s232_s5 = scalar_lea.sflag (!%p1102_p3), [#allocation4], %s1119_s8 }
  0x2d   : > { %s235_s9 = scalar_lea.vmem (!%p1102_p3), [#allocation3], %s678_s1 }
  0x2f   : > { %934 = dma.done.wait (%p1067_p8), %s232_s5, 64  }
  0x30   : > { %936 = vsyncadd (%p1067_p8), %s232_s5, 4294967232  ;;  %s241_s14 = sand.u32 1, %s1043_s20   ;;  %s245_s18 = scalar_lea.vmem [#allocation6], %s678_s1 }
  0x31   : > { %s242_s17 = scalar_lea.sflag [#allocation7], %s241_s14 }
  0x32   : > { %938 = dma.done.wait (%p1067_p8), %s242_s17, 128  }
  0x33   : > { %940 = vsyncadd (%p1067_p8), %s242_s17, 4294967168  ;;  %v291_v0 = vld [vmem:[%s235_s9] sm:$0xf]  ;;  %s977_s6 = smov 16   ;;  %s255_s7 = scalar_lea.vmem [#allocation8], %s678_s1  ;;  %vm289_vm0 = vcmask 125952   ;;  %v313_v13 = vlaneseq }
  0x34   : > { %293 = vrot.lane.b32.xlu0 %v291_v0, %s977_s6  ;;  %v303_v1 = vld [vmem:[%s255_s7] sm:$0xf]  ;;  %v288_v2 = vld [vmem:[%s245_s18] sm:$0xf]  ;;  %vm299_vm1 = vcmask 1043584   ;;  %vm300_vm2 = vcmask 130052  }
  0x35   : > { %290 = vst.msk [vmem:[#allocation2] sm:$0xf] %vm289_vm0, %v288_v2  ;;  %vm296_vm3 = vcmask 130048   ;;  %vm301_vm4 = vmor %vm300_vm2, %vm299_vm1  ;;  %vm308_vm5 = vcmask 257152   ;;  %vm310_vm6 = vcmask 1043712   ;;  %v978_v7 = vmov 0.0  }
  0x36   : > { %s979_s20 = smov 127   ;;  %s980_s27 = smov 1   ;;  %v314_v15 = vand.u32 127, %v313_v13  ;;  %vm376_vm13 = vcmask 1043456  }
  0x37   : > { %s981_s10 = smov 112   ;;  %s681_s11 = sshll.u32 %s963_s16, 1 }
  0x38   : > { %v315_v16 = vadd.s32 128, %v314_v15  ;;  %vm362_vm7 = vcmp.lt.s32.totalorder %v314_v15, 1  ;;  %vm350_vm9 = vcmp.lt.s32.totalorder %v314_v15, 127  ;;  %v320_v21 = vand.u32 15, %v314_v15  ;;  %s531_s26 = sadd.s32 %s959_s15, %s681_s11  ;;  %s287_s22 = scalar_lea.vmem [#allocation9], %s1119_s8 }
  0x39   : > { %vm404_vm14 = vcmp.lt.s32.totalorder %v314_v15, 112  ;;  %vm422_vm15 = vcmp.lt.s32.totalorder %v314_v15, 16  ;;  %s532_s30 = scalar_lea.hbm %s1199_s3, %s531_s26  ;;  %s534_s23 = sshll.u32 %s287_s22, 4  ;;  %s535_s23 = int_to_ptr.vmem [resolvable:$true] %s534_s23 }
  0x3a   : > { %v327_v18 = vand.u32 15, %v315_v16  ;;  %vm365_vm11 = vcmp.lt.s32.totalorder %v320_v21, 15  ;;  %vm380_vm12 = vcmp.ge.s32.totalorder %v320_v21, 1  ;;  %s536_s21 = sshll.u32 %s532_s30, 4  ;;  %s522_s24 = scalar_lea.sflag [#allocation5], %s1119_s8  ;;  %s537_s21 = int_to_ptr.hbm [resolvable:$true] %s536_s21 }
  0x3b   : > { %s887_s1 = sshra.s32 %s537_s21, 4  ;;  %s893_s9 = scalar_lea.hbm %s1199_s3, 4  ;;  %s888_s1 = int_to_ptr.hbm [resolvable:$true] %s887_s1 }
  0x3c   : > { %305 = vrot.lane.b32.xlu0 %v303_v1, %s977_s6  ;;  %vm381_vm8 = vcmp.ge.s32.totalorder %v327_v18, 1  ;;  %vm366_vm10 = vcmp.lt.s32.totalorder %v327_v18, 15  ;;  %s889_s16 = scalar_lea.hbm %s888_s1, 1  ;;  %p894_p7 = scmp.lt.s32.totalorder %s888_s1, %s1199_s3 }
  0x3d   : > { %p890_p4 = scmp.ne.s32.totalorder %s888_s1, %s889_s16  ;;  %p895_p8 = scmp.lt.s32.totalorder %s893_s9, %s889_s16 }
  0x3f   : > { %p891_p5 = pnand %p890_p4, %p1071_p9  ;;  %p896_p10 = por %p895_p8, %p894_p7 }
  0x41   : > { %p892_p6 = pneg %p891_p5 }
  0x43   : > { %p897_p11 = pnand %p896_p10, %p892_p6 }
  0xa6   : > { %v294_v3 = vpop.permute.xlu0 %293 }
  0xa7   : > { %v295_v4 = vrot.slane %v294_v3, 4 }
  0xa9   : > { %v297_v5 = vsel %vm296_vm3, %v295_v4, %v294_v3 }
  0xaa   : > { %302 = vst.msk [vmem:[#allocation2] sm:$0xff] %vm301_vm4, %v297_v5 }
  0xae   : > { %v306_v6 = vpop.permute.xlu0 %305 }
  0xaf   : > { %309 = vst.msk [vmem:[#allocation2 + $0x4] sm:$0xf] %vm308_vm5, %v306_v6 }
  0xb0   : > { %311 = vst.msk [vmem:[#allocation2 + $0x4] sm:$0xf] %vm310_vm6, %v978_v7 }
  0xb7   : > { %v312_v8 = vld [vmem:[#allocation2] sm:$0xff] }
  0xb8   : > { %341 = vst [vmem:[#allocation1] ss:$2 sm:$0xff] %v312_v8 }
  0xbf   : > { %v342_v9 = vld.sshfl [vmem:[#allocation1] sm:$0xff pattern:$0x75316420]  ;;  %v343_v10 = vld.sshfl [vmem:[#allocation1 + $0x8] sm:$0xff pattern:$0x75316420] }
  0xc0   : > { %346 = vrot.lane.b32.xlu1 %v342_v9, %s979_s20  ;;  %353 = vst [vmem:[#allocation1] ss:$2 sm:$0xff] %v312_v8 }
  0xc7   : > { %v354_v11 = vld.sshfl [vmem:[#allocation1] sm:$0xff pattern:$0x75316420]  ;;  %v355_v12 = vld.sshfl [vmem:[#allocation1 + $0x8] sm:$0xff pattern:$0x75316420] }
  0xc8   : > { %348 = vrot.lane.b32.xlu1 %v343_v10, %s979_s20  ;;  %358 = vrot.lane.b32.xlu2 %v354_v11, %s980_s27 }
  0xd0   : > { %360 = vrot.lane.b32.xlu2 %v355_v12, %s980_s27 }
 0x122   : > { %v359_v14 = vpop.permute.xlu2 %358 }
 0x12a   : > { %v361_v19 = vpop.permute.xlu2 %360 }
 0x12b   : > { %v363_v20 = vsel %vm362_vm7, %v359_v14, %v361_v19  ;;  %v364_v27 = vsel %vm362_vm7, %v361_v19, %v359_v14 }
 0x12c   : > { %v387_v22 = vsel %vm381_vm8, %v363_v20, 0.0  ;;  %v386_v32 = vsel %vm380_vm12, %v364_v27, 0.0 }
 0x12d   : > { %v390_v28 = vrot.slane %v387_v22, 4 }
 0x12f   : > { %v391_v34 = vsel %vm376_vm13, %v386_v32, %v390_v28 }
 0x132   : > { %v347_v17 = vpop.permute.xlu1 %346 }
 0x13a   : > { %v349_v23 = vpop.permute.xlu1 %348 }
 0x13b   : > { %v351_v24 = vsel %vm350_vm9, %v347_v17, %v349_v23  ;;  %v352_v25 = vsel %vm350_vm9, %v349_v23, %v347_v17 }
 0x13c   : > { %v372_v26 = vsel %vm366_vm10, %v352_v25, 0.0  ;;  %v371_v30 = vsel %vm365_vm11, %v351_v24, 0.0 }
 0x13d   : > { %v375_v29 = vrot.slane %v372_v26, 4 }
 0x13f   : > { %v377_v31 = vsel %vm376_vm13, %v371_v30, %v375_v29 }
 0x140   : > { %v379_v33 = vadd.f32 %v377_v31, %v312_v8 }
 0x142   : > { %v393_v35 = vadd.f32 %v391_v34, %v379_v33 }
 0x144   : > { %395 = vst [vmem:[#allocation1] ss:$2 sm:$0xff] %v393_v35 }
 0x14b   : > { %v397_v36 = vld.sshfl [vmem:[#allocation1 + $0x8] sm:$0xff pattern:$0x75316420]  ;;  %v396_v37 = vld.sshfl [vmem:[#allocation1] sm:$0xff pattern:$0x75316420] }
 0x14c   : > { %402 = vrot.lane.b32.xlu1 %v397_v36, %s981_s10  ;;  %400 = vrot.lane.b32.xlu0 %v396_v37, %s981_s10  ;;  %413 = vst [vmem:[#allocation1] ss:$2 sm:$0xff] %v393_v35 }
 0x153   : > { %v415_v38 = vld.sshfl [vmem:[#allocation1 + $0x8] sm:$0xff pattern:$0x75316420]  ;;  %v414_v39 = vld.sshfl [vmem:[#allocation1] sm:$0xff pattern:$0x75316420] }
 0x154   : > { %420 = vrot.lane.b32.xlu0 %v415_v38, %s977_s6  ;;  %418 = vrot.lane.b32.xlu2 %v414_v39, %s977_s6 }
 0x1ae   : > { %v419_v45 = vpop.permute.xlu2 %418 }
 0x1be   : > { %v403_v40 = vpop.permute.xlu1 %402  ;;  %v401_v41 = vpop.permute.xlu0 %400 }
 0x1bf   : > { %v406_v42 = vsel %vm404_vm14, %v403_v40, %v401_v41  ;;  %v405_v44 = vsel %vm404_vm14, %v401_v41, %v403_v40 }
 0x1c0   : > { %v409_v43 = vrot.slane %v406_v42, 4 }
 0x1c2   : > { %v410_v46 = vsel %vm376_vm13, %v405_v44, %v409_v43 }
 0x1c3   : > { %v412_v50 = vadd.f32 %v410_v46, %v393_v35 }
 0x1c6   : > { %v421_v47 = vpop.permute.xlu0 %420 }
 0x1c7   : > { %v423_v48 = vsel %vm422_vm15, %v419_v45, %v421_v47  ;;  %v424_v51 = vsel %vm422_vm15, %v421_v47, %v419_v45 }
 0x1c8   : > { %v427_v49 = vrot.slane %v423_v48, 4 }
 0x1ca   : > { %v428_v52 = vsel %vm376_vm13, %v424_v51, %v427_v49 }
 0x1cb   : > { %v430_v53 = vadd.f32 %v428_v52, %v412_v50 }
 0x1cd   : > { %432 = vst [vmem:[#allocation1] ss:$2 sm:$0xff] %v430_v53 }
 0x1d4   : > { %v433_v54 = vld.sshfl [vmem:[#allocation1] sm:$0xff pattern:$0x75316420]  ;;  %v434_v55 = vld.sshfl [vmem:[#allocation1 + $0x8] sm:$0xff pattern:$0x75316420] }
 0x1d5   : > { %v437_v56 = vsel %vm299_vm1, %v433_v54, 0.0  ;;  %v444_v57 = vsel %vm289_vm0, %v434_v55, 0.0 }
 0x1d6   : > { %v438_v58 = vrot.slane %v437_v56, 4  ;;  %v445_v59 = vrot.slane %v444_v57, 4 }
 0x1d8   : > { %v439_v60 = vadd.f32 %v438_v58, %v437_v56  ;;  %v446_v61 = vadd.f32 %v445_v59, %v444_v57 }
 0x1da   : > { %v440_v62 = vrot.slane %v439_v60, 2  ;;  %v447_v63 = vrot.slane %v446_v61, 2 }
 0x1dc   : > { %v441_v0 = vadd.f32 %v440_v62, %v439_v60  ;;  %v448_v1 = vadd.f32 %v447_v63, %v446_v61 }
 0x1de   : > { %v442_v2 = vrot.slane %v441_v0, 1  ;;  %v449_v3 = vrot.slane %v448_v1, 1 }
 0x1e0   : > { %v443_v4 = vadd.f32 %v442_v2, %v441_v0  ;;  %v450_v5 = vadd.f32 %v449_v3, %v448_v1 }
 0x1e2   : > { %777 = vrcp.f32 %v443_v4  ;;  %v476_v13 = vand.u32 2147483648, %v450_v5  ;;  %v474_v15 = vand.u32 2147483647, %v450_v5  ;;  %vm456_vm4 = vweird.f32 %v443_v4 }
 0x1e3   : > { %779 = vrcp.f32 %v450_v5  ;;  %v462_v17 = vand.u32 2147483648, %v443_v4  ;;  %v460_v18 = vand.u32 2147483647, %v443_v4  ;;  %vm470_vm6 = vweird.f32 %v450_v5 }
 0x1e4   : > { %v477_v20 = vor.u32 1.1754944e-38, %v476_v13  ;;  %vm475_vm8 = vcmp.eq.f32.partialorder %v474_v15, 8.507059e+37 }
 0x1e5   : > { %v463_v23 = vor.u32 1.1754944e-38, %v462_v17  ;;  %vm461_vm9 = vcmp.eq.f32.partialorder %v460_v18, 8.507059e+37 }
 0x1e8   : > { %v778_v6 = vpop.eup %777 }
 0x1e9   : > { %v780_v7 = vpop.eup %779  ;;  %v452_v8 = vmul.f32 %v778_v6, %v443_v4  ;;  %vm457_vm2 = vweird.f32 %v778_v6 }
 0x1ea   : > { %v466_v9 = vmul.f32 %v780_v7, %v450_v5  ;;  %vm471_vm3 = vweird.f32 %v780_v7  ;;  %vm458_vm5 = vmor %vm456_vm4, %vm457_vm2 }
 0x1eb   : > { %v453_v10 = vsub.f32 1.0, %v452_v8  ;;  %vm472_vm7 = vmor %vm470_vm6, %vm471_vm3 }
 0x1ec   : > { %v467_v11 = vsub.f32 1.0, %v466_v9 }
 0x1ed   : > { %v454_v12 = vmul.f32 %v778_v6, %v453_v10 }
 0x1ee   : > { %v468_v14 = vmul.f32 %v780_v7, %v467_v11 }
 0x1ef   : > { %v455_v16 = vadd.f32 %v778_v6, %v454_v12 }
 0x1f0   : > { %v469_v19 = vadd.f32 %v780_v7, %v468_v14 }
 0x1f1   : > { %v459_v21 = vsel %vm458_vm5, %v778_v6, %v455_v16 }
 0x1f2   : > { %v473_v22 = vsel %vm472_vm7, %v780_v7, %v469_v19  ;;  %v464_v26 = vsel %vm461_vm9, %v463_v23, %v459_v21 }
 0x1f3   : > { %v478_v24 = vsel %vm475_vm8, %v477_v20, %v473_v22 }
 0x1f4   : > { %v481_v25 = vrot.slane %v478_v24, 4 }
 0x1f6   : > { %v482_v27 = vsel %vm376_vm13, %v464_v26, %v481_v25 }
 0x1f7   : > { %v484_v28 = vmul.f32 %v482_v27, %v430_v53 }
 0x1f9   : > { %v485_v29 = vadd.f32 1e-06, %v484_v28 }
 0x1fb   : > { %781 = vlog2.f32 %v485_v29 }
 0x201   : > { %v782_v30 = vpop.eup %781 }
 0x202   : > { %v487_v31 = vmul.f32 0.6931472, %v782_v30 }
 0x204   : > { %v488_v32 = vmul.f32 %v487_v31, %v484_v28 }
 0x206   : > { %490 = vst [vmem:[#allocation1] ss:$2 sm:$0xff] %v488_v32 }
 0x20d   : > { %v492_v33 = vld.sshfl [vmem:[#allocation1 + $0x8] sm:$0xff pattern:$0x75316420]  ;;  %v491_v34 = vld.sshfl [vmem:[#allocation1] sm:$0xff pattern:$0x75316420] }
 0x20e   : > { %v502_v35 = vsel %vm289_vm0, %v492_v33, 0.0  ;;  %v495_v36 = vsel %vm299_vm1, %v491_v34, 0.0  ;;  %vm517_vm0 = vcmask 916480  }
 0x20f   : > { %v503_v37 = vrot.slane %v502_v35, 4  ;;  %v496_v38 = vrot.slane %v495_v36, 4 }
 0x211   : > { %v504_v39 = vadd.f32 %v503_v37, %v502_v35  ;;  %v497_v40 = vadd.f32 %v496_v38, %v495_v36 }
 0x213   : > { %v505_v41 = vrot.slane %v504_v39, 2  ;;  %v498_v42 = vrot.slane %v497_v40, 2 }
 0x215   : > { %v506_v43 = vadd.f32 %v505_v41, %v504_v39  ;;  %v499_v44 = vadd.f32 %v498_v42, %v497_v40 }
 0x217   : > { %v507_v45 = vrot.slane %v506_v43, 1  ;;  %v500_v46 = vrot.slane %v499_v44, 1 }
 0x219   : > { %v508_v47 = vadd.f32 %v507_v45, %v506_v43  ;;  %v501_v48 = vadd.f32 %v500_v46, %v499_v44 }
 0x21b   : > { %v510_v49 = vsub.f32 0.0, %v508_v47  ;;  %v509_v50 = vsub.f32 0.0, %v501_v48 }
 0x21d   : > { %515 = vrot.lane.b32.xlu2 %v510_v49, %s981_s10  ;;  %513 = vrot.lane.b32.xlu1 %v509_v50, %s981_s10 }
 0x277   : > { %v516_v51 = vpop.permute.xlu2 %515 }
 0x28f   : > { %v514_v52 = vpop.permute.xlu1 %513 }
 0x290   : > { %v518_v53 = vsel %vm517_vm0, %v514_v52, %v516_v51 }
 0x291   : > { %520 = vst [vmem:[%s287_s22] sm:$0x1] %v518_v53 }
 0x292   : > { %900 = shalt.err (!%p897_p11)
}
 0x293   : > { %690 = dma.vmem_to_hbm [thread:$0]  (%p1071_p9), %s535_s23, 16, %s537_s21, %s522_s24  }
 0x294 PF: > { %p707_p13 = scmp.ge.s32.totalorder %s975_s19, 2  ;;  %s548_s8 = sand.u32 1, %s947_s12  }
 0x295   : > { %s549_s18 = scalar_lea.sflag [#allocation5], %s548_s8 }
 0x296   : > { %p703_p0 = pnand %p707_p13, %p1077_p12 }
 0x298   : > { %p704_p1 = pneg %p703_p0 }
 0x29a   : > { %942 = dma.done.wait (%p704_p1), %s549_s18, 16  }
 0x29b   : > { %944 = vsyncadd (%p704_p1), %s549_s18, 4294967280  ;;  %s22_s19 = sadd.s32 1, %s975_s19   ;;  %s1219_s6 = sld [smem:[#allocation13_spill]] }
 0x29c   : > { %p19_p2 = scmp.ge.s32.totalorder %s22_s19, 6   ;;  %s1220_s14 = sld [smem:[#allocation18_spill]] }
 0x29d   : > { %s1221_s15 = sld [smem:[#allocation14_spill]]  ;;  %s1225_s12 = smov %s951_s13 }
 0x29e   : > { %s1222_s16 = sld [smem:[#allocation15_spill]]  ;;  %21 = sbr.rel (!%p19_p2) target bundleno = 11 (0xb), region = 101 }
 0x29f   : > { %s1223_s17 = sld [smem:[#allocation16_spill]] }
 0x2a0   : > { %s1224_s18 = sld [smem:[#allocation17_spill]] }
 0x2a1   : > { %s1226_s13 = smov %s1219_s6 }
 0x2a3   :  { %554 = vsyncpa [#allocation4], 1 }
 0x2a4   :  { %556 = vsyncpa [#allocation4 + $0x1], 1 }
 0x2a5   :  { %557 = vsyncpa [#allocation7], 1 }
 0x2a6   :  { %559 = vsyncpa [#allocation7 + $0x1], 1 }
 0x2a7   :  { %560 = vsyncpa [#allocation5], 1 }
 0x2a8   :  { %562 = vsyncpa [#allocation5 + $0x1], 1 }

</bundles_post_ra>
